<compile_context>
chip_gen: v7x
topology: tpu7x:2x2x1
jax: 0.10.0
libtpu: 0.0.40
codegen_flags: <defaults>
</compile_context>

<pallas_src>
import jax
import jax.numpy as jnp
from jax.experimental import pallas as pl
from jax.experimental.pallas import tpu as pltpu

IN_DIM = 2
HID_DIM = 64
OUT_DIM = 7

PAD_H = 128       # hidden / output lanes padded to 128 (lane-dense)
MAX_TILE_B = 2048


def _round_up(n, m):
    return -(-n // m) * m


def _qnet_kernel(x_ref, w1_ref, b1_ref, w2_ref, b2_ref, w3_ref, b3_ref,
                 w4_ref, b4_ref, o_ref):
    """One batch tile of the 4-layer MLP.

    Layer 1 (K=2) on the VPU in f32; layers 2-4 on the MXU with bf16 inputs
    and f32 accumulation; bf16 lane-dense output.
    """
    x = x_ref[...]                       # (TB, 2) f32 — raw states, no quant
    w1 = w1_ref[...]                     # (2, 128) f32
    # Layer 1: two broadcast FMAs (VALU) — a K=2 MXU pass would be <6% utilized
    # and sits at the head of the dependency chain.
    h = x[:, 0:1] * w1[0:1, :] + x[:, 1:2] * w1[1:2, :] + b1_ref[...]
    h = jnp.maximum(h, 0.0)                                       # f32 ReLU
    h = jnp.dot(h.astype(jnp.bfloat16), w2_ref[...],
                preferred_element_type=jnp.float32) + b2_ref[...]
    h = jnp.maximum(h, 0.0)
    h = jnp.dot(h.astype(jnp.bfloat16), w3_ref[...],
                preferred_element_type=jnp.float32) + b3_ref[...]
    h = jnp.maximum(h, 0.0)
    out = jnp.dot(h.astype(jnp.bfloat16), w4_ref[...],
                  preferred_element_type=jnp.float32) + b4_ref[...]
    o_ref[...] = out.astype(o_ref.dtype)                          # bf16 store


def _pad2d(a, rows, cols, dtype):
    out = jnp.zeros((rows, cols), jnp.float32)
    out = out.at[:a.shape[0], :a.shape[1]].set(a.astype(jnp.float32))
    return out.astype(dtype)


def prepare_params(params):
    """Pad + cast parameters ONCE (init / param-update time, not per call).

    w1/b1 stay f32 (layer 1 runs on the VPU); w2..w4 are bf16 (128,128) for
    the MXU; biases stay f32 (1,128) so they add onto the f32 accumulator.
    """
    (w1, b1), (w2, b2), (w3, b3), (w4, b4) = params
    return (
        _pad2d(w1, IN_DIM, PAD_H, jnp.float32),
        _pad2d(b1[None, :], 1, PAD_H, jnp.float32),
        _pad2d(w2, PAD_H, PAD_H, jnp.bfloat16),
        _pad2d(b2[None, :], 1, PAD_H, jnp.float32),
        _pad2d(w3, PAD_H, PAD_H, jnp.bfloat16),
        _pad2d(b3[None, :], 1, PAD_H, jnp.float32),
        _pad2d(w4, PAD_H, PAD_H, jnp.bfloat16),
        _pad2d(b4[None, :], 1, PAD_H, jnp.float32),
    )


@jax.jit
def qnet_forward(x, prepared):
    """x: (B, 2) float32 -> (B, 7) float32, matching Qnet.forward."""
    w1, b1, w2, b2, w3, b3, w4, b4 = prepared
    B = x.shape[0]

    # Batch tile: for B >= 32 force >= 2 grid steps so the "parallel" axis can
    # shard across both TensorCores on v7x; cap at MAX_TILE_B so per-step
    # overhead is amortized on single-TC generations without VMEM pressure.
    if B > MAX_TILE_B:
        tile_b = MAX_TILE_B
    elif B >= 32:
        tile_b = _round_up(-(-B // 2), 16)
    else:
        tile_b = _round_up(B, 16)
    bp = _round_up(B, tile_b)
    grid = (bp // tile_b,)

    # Only the batch axis needs padding; features stay at 2 (VPU layer 1).
    x = x.astype(jnp.float32)
    x_p = x if bp == B else jnp.pad(x, ((0, bp - B), (0, 0)))

    resident = lambda i: (0, 0)                  # weights/biases: VMEM-resident
    w_spec = pl.BlockSpec((PAD_H, PAD_H), resident)
    b_spec = pl.BlockSpec((1, PAD_H), resident)

    out_p = pl.pallas_call(
        _qnet_kernel,
        out_shape=jax.ShapeDtypeStruct((bp, PAD_H), jnp.bfloat16),
        grid=grid,
        in_specs=[
            pl.BlockSpec((tile_b, IN_DIM), lambda i: (i, 0)),   # x batch tile
            pl.BlockSpec((IN_DIM, PAD_H), resident), b_spec,    # fc1 (f32)
            w_spec, b_spec,                                     # fc2 (bf16)
            w_spec, b_spec,                                     # fc3 (bf16)
            w_spec, b_spec,                                     # fc4 (bf16)
        ],
        out_specs=pl.BlockSpec((tile_b, PAD_H), lambda i: (i, 0)),
        compiler_params=pltpu.CompilerParams(
            dimension_semantics=("parallel",)),
    )(x_p, w1, b1, w2, b2, w3, b3, w4, b4)

    # Fused slice of the valid (B, 7) block + upcast back to f32.
    return out_p[:B, :OUT_DIM].astype(jnp.float32)


def init_params(key):
    """Init mimicking torch.nn.Linear defaults: U(-1/sqrt(fan_in), +).
    Weights stored as (in_features, out_features)."""
    dims = [(IN_DIM, HID_DIM), (HID_DIM, HID_DIM),
            (HID_DIM, HID_DIM), (HID_DIM, OUT_DIM)]
    params = []
    keys = jax.random.split(key, 2 * len(dims))
    for i, (fin, fout) in enumerate(dims):
        bound = 1.0 / (fin ** 0.5)
        w = jax.random.uniform(keys[2 * i], (fin, fout), jnp.float32,
                               -bound, bound)
        b = jax.random.uniform(keys[2 * i + 1], (fout,), jnp.float32,
                               -bound, bound)
        params.append((w, b))
    return tuple(params)


def reference_forward(x, params):
    """Pure-f32 JAX reference of Qnet.forward (the PyTorch spec)."""
    (w1, b1), (w2, b2), (w3, b3), (w4, b4) = params
    h = jnp.maximum(x @ w1 + b1, 0.0)
    h = jnp.maximum(h @ w2 + b2, 0.0)
    h = jnp.maximum(h @ w3 + b3, 0.0)
    return h @ w4 + b4


def reference_forward_matched(x, prepared):
    """Same precision path as the kernel (f32 VPU layer 1, bf16 MXU layers,
    f32 accumulate, bf16 output)."""
    w1, b1, w2, b2, w3, b3, w4, b4 = prepared
    x = x.astype(jnp.float32)
    h = x[:, 0:1] * w1[0:1, :] + x[:, 1:2] * w1[1:2, :] + b1
    h = jnp.maximum(h, 0.0)
    h = jnp.maximum(jnp.dot(h.astype(jnp.bfloat16), w2,
                            preferred_element_type=jnp.float32) + b2, 0.0)
    h = jnp.maximum(jnp.dot(h.astype(jnp.bfloat16), w3,
                            preferred_element_type=jnp.float32) + b3, 0.0)
    out = jnp.dot(h.astype(jnp.bfloat16), w4,
                  preferred_element_type=jnp.float32) + b4
    return out.astype(jnp.bfloat16)[:, :OUT_DIM].astype(jnp.float32)


if __name__ == "__main__":
    key = jax.random.PRNGKey(0)
    k_param, k_x = jax.random.split(key)
    params = init_params(k_param)
    prepared = prepare_params(params)   # one-time pad + cast

    # Acting-path batch (B=2, single grid step).
    x = jax.random.normal(k_x, (2, IN_DIM), jnp.float32)
    out = jax.block_until_ready(qnet_forward(x, prepared))
    assert out.shape == (2, OUT_DIM), out.shape
    ref_m = reference_forward_matched(x, prepared)
    assert jnp.allclose(out, ref_m, atol=1e-2, rtol=1e-2), (out, ref_m)
    ref_f32 = reference_forward(x, params)
    assert jnp.allclose(out, ref_f32, atol=5e-2, rtol=5e-2), (out, ref_f32)

    # Replay-batch path (B=64 -> 2 grid steps; megacore split on v7x).
    x_big = jax.random.normal(jax.random.PRNGKey(1), (64, IN_DIM), jnp.float32)
    out_big = jax.block_until_ready(qnet_forward(x_big, prepared))
    assert out_big.shape == (64, OUT_DIM), out_big.shape
    ref_big_m = reference_forward_matched(x_big, prepared)
    assert jnp.allclose(out_big, ref_big_m, atol=1e-2, rtol=1e-2)
    ref_big_f32 = reference_forward(x_big, params)
    assert jnp.allclose(out_big, ref_big_f32, atol=5e-2, rtol=5e-2)

    print("KERNEL_OK")
</pallas_src>

<mosaic_0001>
module attributes {stable_mosaic.version = 11 : i64} {
  func.func @_qnet_kernel(%arg0: i32, %arg1: memref<16x2xf32, #tpu.memory_space<vmem>>, %arg2: memref<2x128xf32, #tpu.memory_space<vmem>>, %arg3: memref<1x128xf32, #tpu.memory_space<vmem>>, %arg4: memref<128x128xbf16, #tpu.memory_space<vmem>>, %arg5: memref<1x128xf32, #tpu.memory_space<vmem>>, %arg6: memref<128x128xbf16, #tpu.memory_space<vmem>>, %arg7: memref<1x128xf32, #tpu.memory_space<vmem>>, %arg8: memref<128x128xbf16, #tpu.memory_space<vmem>>, %arg9: memref<1x128xf32, #tpu.memory_space<vmem>>, %arg10: memref<16x128xbf16, #tpu.memory_space<vmem>>) attributes {dimension_semantics = [#tpu.dimension_semantics<parallel>], iteration_bounds = array<i64: 1>, scalar_prefetch = 0 : i64, scratch_operands = 0 : i64, tpu.core_type = #tpu.core_type<tc>, window_params = [{transform_indices = @transform_0, window_bounds = array<i64: 16, 2>}, {pipeline_mode = #tpu.pipeline_mode<synchronous>, transform_indices = @transform_1, window_bounds = array<i64: 2, 128>}, {pipeline_mode = #tpu.pipeline_mode<synchronous>, transform_indices = @transform_2, window_bounds = array<i64: 1, 128>}, {pipeline_mode = #tpu.pipeline_mode<synchronous>, transform_indices = @transform_3, window_bounds = array<i64: 128, 128>}, {pipeline_mode = #tpu.pipeline_mode<synchronous>, transform_indices = @transform_4, window_bounds = array<i64: 1, 128>}, {pipeline_mode = #tpu.pipeline_mode<synchronous>, transform_indices = @transform_5, window_bounds = array<i64: 128, 128>}, {pipeline_mode = #tpu.pipeline_mode<synchronous>, transform_indices = @transform_6, window_bounds = array<i64: 1, 128>}, {pipeline_mode = #tpu.pipeline_mode<synchronous>, transform_indices = @transform_7, window_bounds = array<i64: 128, 128>}, {pipeline_mode = #tpu.pipeline_mode<synchronous>, transform_indices = @transform_8, window_bounds = array<i64: 1, 128>}, {transform_indices = @transform_9, window_bounds = array<i64: 16, 128>}]} {
    %c0 = arith.constant 0 : index
    %c0_0 = arith.constant 0 : index
    %0 = vector.load %arg1[%c0, %c0_0] : memref<16x2xf32, #tpu.memory_space<vmem>>, vector<16x2xf32>
    %c0_1 = arith.constant 0 : index
    %c0_2 = arith.constant 0 : index
    %1 = vector.load %arg2[%c0_1, %c0_2] : memref<2x128xf32, #tpu.memory_space<vmem>>, vector<2x128xf32>
    %2 = vector.extract_strided_slice %0 {offsets = [0, 0], sizes = [16, 1], strides = [1, 1]} : vector<16x2xf32> to vector<16x1xf32>
    %3 = vector.extract_strided_slice %1 {offsets = [0, 0], sizes = [1, 128], strides = [1, 1]} : vector<2x128xf32> to vector<1x128xf32>
    %4 = vector.broadcast %2 : vector<16x1xf32> to vector<16x128xf32>
    %5 = vector.broadcast %3 : vector<1x128xf32> to vector<16x128xf32>
    %6 = arith.mulf %4, %5 : vector<16x128xf32>
    %7 = vector.extract_strided_slice %0 {offsets = [0, 1], sizes = [16, 1], strides = [1, 1]} : vector<16x2xf32> to vector<16x1xf32>
    %8 = vector.extract_strided_slice %1 {offsets = [1, 0], sizes = [1, 128], strides = [1, 1]} : vector<2x128xf32> to vector<1x128xf32>
    %9 = vector.broadcast %7 : vector<16x1xf32> to vector<16x128xf32>
    %10 = vector.broadcast %8 : vector<1x128xf32> to vector<16x128xf32>
    %11 = arith.mulf %9, %10 : vector<16x128xf32>
    %12 = arith.addf %6, %11 : vector<16x128xf32>
    %c0_3 = arith.constant 0 : index
    %c0_4 = arith.constant 0 : index
    %13 = vector.load %arg3[%c0_3, %c0_4] : memref<1x128xf32, #tpu.memory_space<vmem>>, vector<1x128xf32>
    %14 = vector.broadcast %13 : vector<1x128xf32> to vector<16x128xf32>
    %15 = arith.addf %12, %14 : vector<16x128xf32>
    %cst = arith.constant 0.000000e+00 : f32
    %16 = vector.broadcast %cst : f32 to vector<16x128xf32>
    %17 = arith.maximumf %15, %16 : vector<16x128xf32>
    %18 = arith.truncf %17 : vector<16x128xf32> to vector<16x128xbf16>
    %c0_5 = arith.constant 0 : index
    %c0_6 = arith.constant 0 : index
    %19 = vector.load %arg4[%c0_5, %c0_6] : memref<128x128xbf16, #tpu.memory_space<vmem>>, vector<128x128xbf16>
    %cst_7 = arith.constant dense<0.000000e+00> : vector<16x128xf32>
    %20 = tpu.matmul %18, %19, %cst_7 {dimension_numbers = #tpu.dot_dimension_numbers<[1], [0], [0], [1], [0, 0, 1, 1], [], []>} : vector<16x128xbf16>, vector<128x128xbf16>, vector<16x128xf32> -> vector<16x128xf32>
    %c0_8 = arith.constant 0 : index
    %c0_9 = arith.constant 0 : index
    %21 = vector.load %arg5[%c0_8, %c0_9] : memref<1x128xf32, #tpu.memory_space<vmem>>, vector<1x128xf32>
    %22 = vector.broadcast %21 : vector<1x128xf32> to vector<16x128xf32>
    %23 = arith.addf %20, %22 : vector<16x128xf32>
    %cst_10 = arith.constant 0.000000e+00 : f32
    %24 = vector.broadcast %cst_10 : f32 to vector<16x128xf32>
    %25 = arith.maximumf %23, %24 : vector<16x128xf32>
    %26 = arith.truncf %25 : vector<16x128xf32> to vector<16x128xbf16>
    %c0_11 = arith.constant 0 : index
    %c0_12 = arith.constant 0 : index
    %27 = vector.load %arg6[%c0_11, %c0_12] : memref<128x128xbf16, #tpu.memory_space<vmem>>, vector<128x128xbf16>
    %cst_13 = arith.constant dense<0.000000e+00> : vector<16x128xf32>
    %28 = tpu.matmul %26, %27, %cst_13 {dimension_numbers = #tpu.dot_dimension_numbers<[1], [0], [0], [1], [0, 0, 1, 1], [], []>} : vector<16x128xbf16>, vector<128x128xbf16>, vector<16x128xf32> -> vector<16x128xf32>
    %c0_14 = arith.constant 0 : index
    %c0_15 = arith.constant 0 : index
    %29 = vector.load %arg7[%c0_14, %c0_15] : memref<1x128xf32, #tpu.memory_space<vmem>>, vector<1x128xf32>
    %30 = vector.broadcast %29 : vector<1x128xf32> to vector<16x128xf32>
    %31 = arith.addf %28, %30 : vector<16x128xf32>
    %cst_16 = arith.constant 0.000000e+00 : f32
    %32 = vector.broadcast %cst_16 : f32 to vector<16x128xf32>
    %33 = arith.maximumf %31, %32 : vector<16x128xf32>
    %34 = arith.truncf %33 : vector<16x128xf32> to vector<16x128xbf16>
    %c0_17 = arith.constant 0 : index
    %c0_18 = arith.constant 0 : index
    %35 = vector.load %arg8[%c0_17, %c0_18] : memref<128x128xbf16, #tpu.memory_space<vmem>>, vector<128x128xbf16>
    %cst_19 = arith.constant dense<0.000000e+00> : vector<16x128xf32>
    %36 = tpu.matmul %34, %35, %cst_19 {dimension_numbers = #tpu.dot_dimension_numbers<[1], [0], [0], [1], [0, 0, 1, 1], [], []>} : vector<16x128xbf16>, vector<128x128xbf16>, vector<16x128xf32> -> vector<16x128xf32>
    %c0_20 = arith.constant 0 : index
    %c0_21 = arith.constant 0 : index
    %37 = vector.load %arg9[%c0_20, %c0_21] : memref<1x128xf32, #tpu.memory_space<vmem>>, vector<1x128xf32>
    %38 = vector.broadcast %37 : vector<1x128xf32> to vector<16x128xf32>
    %39 = arith.addf %36, %38 : vector<16x128xf32>
    %40 = arith.truncf %39 : vector<16x128xf32> to vector<16x128xbf16>
    %c0_22 = arith.constant 0 : index
    %c0_23 = arith.constant 0 : index
    %41 = vector.load %arg10[%c0_22, %c0_23] : memref<16x128xbf16, #tpu.memory_space<vmem>>, vector<16x128xbf16>
    tpu.vector_store %arg10[%c0_22, %c0_23], %40 {strides = array<i32>} : memref<16x128xbf16, #tpu.memory_space<vmem>>, vector<16x128xbf16>,
    return
  }
  func.func @transform_0(%arg0: i32) -> (i32, i32) {
    %c0_i32 = arith.constant 0 : i32
    %c0_i32_0 = arith.constant 0 : i32
    return %arg0, %c0_i32 : i32, i32
  }
  func.func @transform_1(%arg0: i32) -> (i32, i32) {
    %c0_i32 = arith.constant 0 : i32
    %c0_i32_0 = arith.constant 0 : i32
    %c0_i32_1 = arith.constant 0 : i32
    return %c0_i32, %c0_i32_0 : i32, i32
  }
  func.func @transform_2(%arg0: i32) -> (i32, i32) {
    %c0_i32 = arith.constant 0 : i32
    %c0_i32_0 = arith.constant 0 : i32
    %c0_i32_1 = arith.constant 0 : i32
    return %c0_i32, %c0_i32_0 : i32, i32
  }
  func.func @transform_3(%arg0: i32) -> (i32, i32) {
    %c0_i32 = arith.constant 0 : i32
    %c0_i32_0 = arith.constant 0 : i32
    %c0_i32_1 = arith.constant 0 : i32
    return %c0_i32, %c0_i32_0 : i32, i32
  }
  func.func @transform_4(%arg0: i32) -> (i32, i32) {
    %c0_i32 = arith.constant 0 : i32
    %c0_i32_0 = arith.constant 0 : i32
    %c0_i32_1 = arith.constant 0 : i32
    return %c0_i32, %c0_i32_0 : i32, i32
  }
  func.func @transform_5(%arg0: i32) -> (i32, i32) {
    %c0_i32 = arith.constant 0 : i32
    %c0_i32_0 = arith.constant 0 : i32
    %c0_i32_1 = arith.constant 0 : i32
    return %c0_i32, %c0_i32_0 : i32, i32
  }
  func.func @transform_6(%arg0: i32) -> (i32, i32) {
    %c0_i32 = arith.constant 0 : i32
    %c0_i32_0 = arith.constant 0 : i32
    %c0_i32_1 = arith.constant 0 : i32
    return %c0_i32, %c0_i32_0 : i32, i32
  }
  func.func @transform_7(%arg0: i32) -> (i32, i32) {
    %c0_i32 = arith.constant 0 : i32
    %c0_i32_0 = arith.constant 0 : i32
    %c0_i32_1 = arith.constant 0 : i32
    return %c0_i32, %c0_i32_0 : i32, i32
  }
  func.func @transform_8(%arg0: i32) -> (i32, i32) {
    %c0_i32 = arith.constant 0 : i32
    %c0_i32_0 = arith.constant 0 : i32
    %c0_i32_1 = arith.constant 0 : i32
    return %c0_i32, %c0_i32_0 : i32, i32
  }
  func.func @transform_9(%arg0: i32) -> (i32, i32) {
    %c0_i32 = arith.constant 0 : i32
    %c0_i32_0 = arith.constant 0 : i32
    return %arg0, %c0_i32 : i32, i32
  }
}

</mosaic_0001>

<bundles_post_ra>
// kernel: qnet_forward.1
= control target key start
LH: loop header
LB: loop body
LE: loop exit
PB: predicated region body
PF: predicated region fallthrough
CT: control target
= control target key end

     0   :  { %14 = vsyncpa [#allocation3], 0  ;;  %s874_s0 = inlined_call_operand.vmem [shape: f32[16,2], index: 0, kind: input, shape index: {}]   ;;  %s875_s1 = inlined_call_operand.vmem [shape: f32[2,128], index: 1, kind: input, shape index: {}]   ;;  %s876_s2 = inlined_call_operand.vmem [shape: f32[1,128], index: 2, kind: input, shape index: {}]   ;;  %s877_s3 = inlined_call_operand.hbm [shape: bf16[128,128], index: 3, kind: input, shape index: {}]   ;;  %s878_s4 = inlined_call_operand.vmem [shape: f32[1,128], index: 4, kind: input, shape index: {}]   ;;  %s879_s5 = inlined_call_operand.hbm [shape: bf16[128,128], index: 5, kind: input, shape index: {}]   ;;  %s880_s6 = inlined_call_operand.vmem [shape: f32[1,128], index: 6, kind: input, shape index: {}]   ;;  %s881_s7 = inlined_call_operand.hbm [shape: bf16[128,128], index: 7, kind: input, shape index: {}]   ;;  %s882_s8 = inlined_call_operand.vmem [shape: f32[1,128], index: 8, kind: input, shape index: {}]   ;;  %s883_s9 = inlined_call_operand.vmem [shape: bf16[16,128], index: 9, kind: output, shape index: {}]  }
   0x1   :  { %15 = vsyncpa [#allocation5], 0  ;;  %s709_s30 = smov [#allocation4]   ;;  %s710_s11 = smov [#allocation2]  }
   0x2   :  { %s41_s10 = sshll.u32 %s709_s30, 4  ;;  %s27_s12 = sshll.u32 %s710_s11, 4  ;;  %s42_s10 = int_to_ptr.vmem [resolvable:$true] %s41_s10  ;;  %s768_s12 = int_to_ptr.vmem [resolvable:$true] %s27_s12 }
   0x3   :  { %s639_s15 = scalar_lea.hbm %s879_s5, 1024 }
   0x4   :  { %p640_p0 = scmp.ne.s32.totalorder %s879_s5, %s639_s15  ;;  %p643_p1 = scmp.lt.u32.totalorder %s639_s15, %s879_s5 }
   0x6   :  { %p645_p2 = pnand %p643_p1, %p640_p0 }
   0x8   :  { %648 = shalt.err (!%p645_p2)
}
   0x9   :  { %s649_s20 = scalar_lea.vmem %s42_s10, 1024  ;;  %p654_p4 = scmp.lt.s32.totalorder %s42_s10, %s42_s10 }
   0xa   :  { %p650_p3 = scmp.ne.s32.totalorder %s42_s10, %s649_s20  ;;  %p655_p5 = scmp.lt.s32.totalorder %s649_s20, %s649_s20 }
   0xc   :  { %p656_p6 = por %p655_p5, %p654_p4 }
   0xe   :  { %p657_p7 = pnand %p656_p6, %p650_p3 }
  0x10   :  { %660 = shalt.err (!%p657_p7)
}
  0x11   :  { %s711_s21 = smov 64   ;;  %s712_s22 = smov 4  }
  0x12   :  { %47 = dma.hbm_to_vmem [thread:$0]  %s879_s5, 1024, %s42_s10, [#allocation5], %s711_s21, %s711_s21, %s712_s22  }
  0x13   :  { %s661_s27 = scalar_lea.hbm %s877_s3, 1024 }
  0x14   :  { %p662_p8 = scmp.ne.s32.totalorder %s877_s3, %s661_s27  ;;  %p665_p9 = scmp.lt.u32.totalorder %s661_s27, %s877_s3 }
  0x16   :  { %p667_p10 = pnand %p665_p9, %p662_p8 }
  0x18   :  { %670 = shalt.err (!%p667_p10)
}
  0x19   :  { %s671_s13 = scalar_lea.vmem %s768_s12, 1024  ;;  %p676_p12 = scmp.lt.s32.totalorder %s768_s12, %s768_s12 }
  0x1a   :  { %p672_p11 = scmp.ne.s32.totalorder %s768_s12, %s671_s13  ;;  %p677_p13 = scmp.lt.s32.totalorder %s671_s13, %s671_s13 }
  0x1c   :  { %p678_p0 = por %p677_p13, %p676_p12 }
  0x1e   :  { %p679_p1 = pnand %p678_p0, %p672_p11 }
  0x20   :  { %682 = shalt.err (!%p679_p1)
}
  0x21   :  { %33 = dma.hbm_to_vmem [thread:$0]  %s877_s3, 1024, %s768_s12, [#allocation3], %s711_s21, %s711_s21, %s712_s22  }
  0x22   :  { %s713_s14 = smov [#allocation6]   ;;  %s683_s18 = scalar_lea.hbm %s881_s7, 1024 }
  0x23   :  { %s55_s15 = sshll.u32 %s713_s14, 4  ;;  %p684_p2 = scmp.ne.s32.totalorder %s881_s7, %s683_s18  ;;  %s56_s15 = int_to_ptr.vmem [resolvable:$true] %s55_s15 }
  0x24   :  { %p687_p3 = scmp.lt.u32.totalorder %s683_s18, %s881_s7 }
  0x26   :  { %p689_p4 = pnand %p687_p3, %p684_p2 }
  0x28   :  { %692 = shalt.err (!%p689_p4)
}
  0x29   :  { %s693_s25 = scalar_lea.vmem %s56_s15, 1024  ;;  %p698_p6 = scmp.lt.s32.totalorder %s56_s15, %s56_s15 }
  0x2a   :  { %p694_p5 = scmp.ne.s32.totalorder %s56_s15, %s693_s25  ;;  %p699_p7 = scmp.lt.s32.totalorder %s693_s25, %s693_s25 }
  0x2c   :  { %p700_p8 = por %p699_p7, %p698_p6 }
  0x2e   :  { %p701_p9 = pnand %p700_p8, %p694_p5 }
  0x30   :  { %704 = shalt.err (!%p701_p9)
}
  0x31   :  { %61 = dma.hbm_to_vmem [thread:$0]  %s881_s7, 1024, %s56_s15, [#allocation5], %s711_s21, %s711_s21, %s712_s22  }
  0x32   :  { %705 = dma.done.wait [#allocation3], 1024  }
  0x33   :  { %706 = vsyncadd [#allocation3], 4294966272 }
  0x34   :  { %707 = dma.done.wait [#allocation5], 2048  }
  0x35   :  { %708 = vsyncadd [#allocation5], 4294965248  ;;  %v714_v0 = vmov 1   ;;  %v715_v1 = vmov 0   ;;  %v716_v2 = vmov 0.0   ;;  %v74_v3 = vld [vmem:[%s874_s0] sm:$0xff]  ;;  %v87_v19 = vlaneseq }
  0x36   :  { %613 = vset.pattern.permute.xlu1 %v714_v0  ;;  %612 = vset.pattern.permute.xlu0 %v715_v1  ;;  %v615_v4 = vld [vmem:[#allocation2] sm:$0xff]   ;;  %v75_v5 = vld [vmem:[%s874_s0 + $0x8] sm:$0xff]  ;;  %v617_v7 = vld [vmem:[#allocation2 + $0x10] sm:$0xff]   ;;  %vm717_vm0 = vmmov 0  }
  0x37   :  { %543 = vmatprep.subr.bf16.mxu0 %v716_v2  ;;  %563 = vmatprep.subr.bf16.mxu1 %v716_v2  ;;  %v616_v6 = vld [vmem:[#allocation2 + $0x8] sm:$0xff]   ;;  %v618_v8 = vld [vmem:[#allocation2 + $0x18] sm:$0xff]   ;;  %v619_v9 = vld [vmem:[#allocation2 + $0x20] sm:$0xff]   ;;  %v88_v20 = vshrl.u32 %v87_v19, 7 }
  0x38   :  { %94 = vperm.xlu1 %613, %v74_v3   ;;  %79 = vperm.xlu0 %612, %v74_v3   ;;  %v623_v10 = vld [vmem:[#allocation4] sm:$0xff]   ;;  %v620_v11 = vld [vmem:[#allocation2 + $0x28] sm:$0xff]   ;;  %v625_v13 = vld [vmem:[#allocation4 + $0x10] sm:$0xff]  }
  0x39   :  { %544 = vmatpush3.bf16.msra.mxu0 %v615_v4  ;;  %559 = vmatprep.mubr.msk.bf16.mxu0 %vm717_vm0, %v716_v2  ;;  %v624_v12 = vld [vmem:[#allocation4 + $0x8] sm:$0xff]   ;;  %v621_v14 = vld [vmem:[#allocation2 + $0x30] sm:$0xff]   ;;  %v626_v15 = vld [vmem:[#allocation4 + $0x18] sm:$0xff]   ;;  %v103_v21 = vsub.s32 1, %v88_v20  ;;  %v89_v22 = vsub.s32 0, %v88_v20 }
  0x3a   :  { %545 = vmatprep.subr.bf16.mxu0 %v716_v2  ;;  %579 = vmatprep.mubr.msk.bf16.mxu1 %vm717_vm0, %v716_v2  ;;  %v622_v16 = vld [vmem:[#allocation2 + $0x38] sm:$0xff]   ;;  %v627_v17 = vld [vmem:[#allocation4 + $0x20] sm:$0xff]   ;;  %v628_v18 = vld [vmem:[#allocation4 + $0x28] sm:$0xff]  }
  0x3b   :  { %564 = vmatpush3.bf16.msra.mxu1 %v623_v10  ;;  %v76_v23 = vld [vmem:[%s875_s1] sm:$0x3]  ;;  %v629_v42 = vld [vmem:[#allocation4 + $0x30] sm:$0xff]   ;;  %v630_v43 = vld [vmem:[#allocation4 + $0x38] sm:$0xff]  }
  0x3c   :  { %98 = vperm.xlu1 %613, %v75_v5   ;;  %84 = vperm.xlu0 %612, %v75_v5   ;;  %v104_v24 = vrot.slane %v76_v23, %v103_v21  ;;  %v90_v25 = vrot.slane %v76_v23, %v89_v22  ;;  %v479_v31 = vld [vmem:[%s876_s2] ss:$0 sm:$0xff]  ;;  %v632_v45 = vld [vmem:[#allocation6 + $0x8] sm:$0xff]   ;;  %v633_v46 = vld [vmem:[#allocation6 + $0x10] sm:$0xff]  }
  0x3d   :  { %546 = vmatpush3.bf16.msra.mxu0 %v616_v6  ;;  %565 = vmatprep.subr.bf16.mxu1 %v716_v2  ;;  %v631_v44 = vld [vmem:[#allocation6] sm:$0xff]   ;;  %v634_v47 = vld [vmem:[#allocation6 + $0x18] sm:$0xff]   ;;  %v636_v49 = vld [vmem:[#allocation6 + $0x28] sm:$0xff]  }
  0x3e   :  { %547 = vmatprep.subr.bf16.mxu0 %v716_v2  ;;  %v635_v48 = vld [vmem:[#allocation6 + $0x20] sm:$0xff]   ;;  %v637_v60 = vld [vmem:[#allocation6 + $0x30] sm:$0xff]   ;;  %v638_v61 = vld [vmem:[#allocation6 + $0x38] sm:$0xff]  }
  0x3f   :  { %566 = vmatpush3.bf16.msra.mxu1 %v624_v12  ;;  %v480_v50 = vld [vmem:[%s878_s4] ss:$0 sm:$0xff] }
  0x40   :  { %614 = vset.pattern.permute.xlu0 %v714_v0  ;;  %567 = vmatprep.subr.bf16.mxu1 %v716_v2  ;;  %v489_v62 = vld [vmem:[%s880_s6] ss:$0 sm:$0xff] }
  0x41   :  { %548 = vmatpush3.bf16.msra.mxu0 %v617_v7 }
  0x42   :  { %549 = vmatprep.subr.bf16.mxu0 %v716_v2 }
  0x43   :  { %568 = vmatpush3.bf16.msra.mxu1 %v625_v13 }
  0x44   :  { %569 = vmatprep.subr.bf16.mxu1 %v716_v2 }
  0x45   :  { %550 = vmatpush3.bf16.msra.mxu0 %v618_v8 }
  0x46   :  { %551 = vmatprep.subr.bf16.mxu0 %v716_v2 }
  0x47   :  { %570 = vmatpush3.bf16.msra.mxu1 %v626_v15 }
  0x48   :  { %571 = vmatprep.subr.bf16.mxu1 %v716_v2 }
  0x49   :  { %552 = vmatpush3.bf16.msra.mxu0 %v619_v9 }
  0x4a   :  { %553 = vmatprep.subr.bf16.mxu0 %v716_v2 }
  0x4b   :  { %572 = vmatpush3.bf16.msra.mxu1 %v627_v17 }
  0x4c   :  { %573 = vmatprep.subr.bf16.mxu1 %v716_v2 }
  0x4d   :  { %554 = vmatpush3.bf16.msra.mxu0 %v620_v11 }
  0x4e   :  { %555 = vmatprep.subr.bf16.mxu0 %v716_v2 }
  0x4f   :  { %574 = vmatpush3.bf16.msra.mxu1 %v628_v18 }
  0x50   :  { %575 = vmatprep.subr.bf16.mxu1 %v716_v2 }
  0x51   :  { %556 = vmatpush3.bf16.msra.mxu0 %v621_v14 }
  0x52   :  { %557 = vmatprep.subr.bf16.mxu0 %v716_v2 }
  0x53   :  { %576 = vmatpush3.bf16.msra.mxu1 %v629_v42 }
  0x54   :  { %577 = vmatprep.subr.bf16.mxu1 %v716_v2 }
  0x55   :  { %558 = vmatpush3.bf16.msra.mxu0 %v622_v16 }
  0x56   :  { %583 = vmatprep.subr.bf16.mxu0 %v716_v2 }
  0x57   :  { %578 = vmatpush3.bf16.msra.mxu1 %v630_v43 }
  0xb7   :  { %v95_v26 = vpop.permute.xlu1 %94  ;;  %v80_v27 = vpop.permute.xlu0 %79 }
  0xb8   :  { %v105_v28 = vmul.f32 %v104_v24, %v95_v26  ;;  %v91_v29 = vmul.f32 %v90_v25, %v80_v27 }
  0xba   :  { %v107_v30 = vadd.f32 %v105_v28, %v91_v29 }
  0xbb   :  { %v99_v32 = vpop.permute.xlu1 %98  ;;  %v85_v33 = vpop.permute.xlu0 %84 }
  0xbc   :  { %v106_v34 = vmul.f32 %v104_v24, %v99_v32  ;;  %v92_v35 = vmul.f32 %v90_v25, %v85_v33  ;;  %v116_v36 = vadd.f32 %v479_v31, %v107_v30 }
  0xbe   :  { %v108_v37 = vadd.f32 %v106_v34, %v92_v35  ;;  %v118_v39 = vmax.f32 %v116_v36, 0.0 }
  0xc0   :  { %v117_v38 = vadd.f32 %v479_v31, %v108_v37 }
  0xc2   :  { %v119_v40 = vmax.f32 %v117_v38, 0.0 }
  0xc4   :  { %v120_v41 = vpack.c.bf16 %v119_v40, %v118_v39 }
  0xc6   :  { %560 = vmatmul.mubr.bf16.vlgmr.msra.gmra.mrb[0].mxu0 %v120_v41 }
  0xc7   :  { %599 = vmatprep.mubr.msk.bf16.mxu0 %vm717_vm0, %v716_v2  ;;  %584 = vmatpush3.bf16.msra.mxu0 %v631_v44 }
  0xc8   :  { %585 = vmatprep.subr.bf16.mxu0 %v716_v2 }
  0xcb   :  { %586 = vmatpush3.bf16.msra.mxu0 %v632_v45 }
  0xcc   :  { %587 = vmatprep.subr.bf16.mxu0 %v716_v2 }
  0xcf   :  { %588 = vmatpush3.bf16.msra.mxu0 %v633_v46 }
  0xd0   :  { %589 = vmatprep.subr.bf16.mxu0 %v716_v2 }
  0xd3   :  { %590 = vmatpush3.bf16.msra.mxu0 %v634_v47 }
  0xd4   :  { %591 = vmatprep.subr.bf16.mxu0 %v716_v2 }
  0xd7   :  { %592 = vmatpush3.bf16.msra.mxu0 %v635_v48 }
  0xd8   :  { %593 = vmatprep.subr.bf16.mxu0 %v716_v2 }
  0xdb   :  { %594 = vmatpush3.bf16.msra.mxu0 %v636_v49 }
  0xdc   :  { %595 = vmatprep.subr.bf16.mxu0 %v716_v2 }
  0xdf   :  { %596 = vmatpush3.bf16.msra.mxu0 %v637_v60 }
  0xe0   :  { %597 = vmatprep.subr.bf16.mxu0 %v716_v2  ;;  %v498_v2 = vld [vmem:[%s882_s8] ss:$0 sm:$0xff] }
  0xe3   :  { %598 = vmatpush3.bf16.msra.mxu0 %v638_v61 }
 0x199   :  { %v226_v51 = vpop.f32.mrb[0].mxu0 }
 0x19a   :  { %v227_v52 = vadd.f32 %v480_v50, %v226_v51  ;;  %v561_v53 = vpop.f32.mrb[1].mxu0 }
 0x19b   :  { %v229_v54 = vpop.f32.mrb[2].mxu0 }
 0x19c   :  { %v230_v55 = vadd.f32 %v480_v50, %v229_v54  ;;  %v562_v56 = vpop.f32.mrb[3].mxu0  ;;  %v233_v57 = vmax.f32 %v227_v52, 0.0 }
 0x19e   :  { %v234_v58 = vmax.f32 %v230_v55, 0.0 }
 0x1a0   :  { %v235_v59 = vpack.c.bf16 %v234_v58, %v233_v57 }
 0x1a2   :  { %580 = vmatmul.mubr.bf16.vlgmr.msra.gmra.mrb[0].mxu1 %v235_v59 }
 0x275   :  { %v341_v63 = vpop.f32.mrb[0].mxu1 }
 0x276   :  { %v342_v0 = vadd.f32 %v489_v62, %v341_v63  ;;  %v581_v1 = vpop.f32.mrb[1].mxu1 }
 0x277   :  { %v344_v3 = vpop.f32.mrb[2].mxu1 }
 0x278   :  { %v345_v4 = vadd.f32 %v489_v62, %v344_v3  ;;  %v582_v5 = vpop.f32.mrb[3].mxu1  ;;  %v348_v6 = vmax.f32 %v342_v0, 0.0 }
 0x27a   :  { %v349_v7 = vmax.f32 %v345_v4, 0.0 }
 0x27c   :  { %v350_v8 = vpack.c.bf16 %v349_v7, %v348_v6 }
 0x27e   :  { %600 = vmatmul.mubr.bf16.vlgmr.msra.gmra.mrb[4].mxu0 %v350_v8 }
 0x351   :  { %v456_v9 = vpop.f32.mrb[4].mxu0 }
 0x352   :  { %v601_v10 = vpop.f32.mrb[5].mxu0  ;;  %v457_v12 = vadd.f32 %v498_v2, %v456_v9 }
 0x353   :  { %v459_v11 = vpop.f32.mrb[6].mxu0 }
 0x354   :  { %v460_v13 = vadd.f32 %v498_v2, %v459_v11  ;;  %v602_v14 = vpop.f32.mrb[7].mxu0 }
 0x356   :  { %v514_v15 = vpack.c.bf16 %v460_v13, %v457_v12 }
 0x358   :  { %515 = vst [vmem:[%s883_s9] sm:$0xff] %v514_v15  }
 0x359   :  { %477 = vsyncpa [#allocation3], 1 }
 0x35a   :  { %478 = vsyncpa [#allocation5], 1 }

</bundles_post_ra>
